<compile_context>
chip_gen: v7x
topology: tpu7x:2x2x1
jax: 0.10.0
libtpu: 0.0.40
codegen_flags: <defaults>
</compile_context>

<pallas_src>
import functools

import jax
import jax.numpy as jnp
from jax.experimental import pallas as pl
from jax.experimental.pallas import tpu as pltpu


def _round_up(a, m):
    return ((a + m - 1) // m) * m


def _global_encoder_kernel(x_ref, batch_ref, w1t_ref, b1_ref, w2t_ref, b2_ref,
                           out_ref, acc_ref):
    n_idx = pl.program_id(1)

    @pl.when(n_idx == 0)
    def _():
        acc_ref[...] = jnp.zeros_like(acc_ref)

    x_t = x_ref[...]                       # (F+1, tile_n) f32, feature-major
    batch_row = batch_ref[...]             # (1, tile_n) i32
    w1t = w1t_ref[...]                     # (Hp, F+1) f32, Hp = round_up(H+1, 8)
    n_feat = x_t.shape[0]                  # F+1 (last row of x_t is the ones row)
    hidden = b1_ref.shape[0]
    tile_b = out_ref.shape[1]

    # Lane-dense per-node projection on the VPU:
    #   aug_t[j, n] = sum_f w1t[j, f] * x_t[f, n]
    # Row `hidden` of w1t is [0,...,0,1] and row F of x_t is the ones row, so
    # aug_t[hidden, n] == 1 for real nodes (segment counts come out of the same
    # matmul below). Padded node columns are all-zero.
    aug_t = w1t[:, 0:1] * x_t[0:1, :]
    for f in range(1, n_feat):
        aug_t = aug_t + w1t[:, f:f + 1] * x_t[f:f + 1, :]        # (Hp, tile_n)

    # One-hot segment matrix for this graph tile (graphs x nodes); padded nodes
    # carry batch id -1 and match no graph.
    b_off = pl.program_id(0) * tile_b
    graph_ids = b_off + jax.lax.broadcasted_iota(jnp.int32, (tile_b, 1), 0)
    onehot = (graph_ids == batch_row).astype(jnp.float32)        # (tile_b, tile_n)

    # Single MXU op per step: contract over the node dim with a transposed RHS
    # (flash-attention trans-B idiom) -> lane-dense (Hp, tile_b) update holding
    # per-graph feature sums (rows < hidden) and node counts (row `hidden`).
    acc_ref[...] += jax.lax.dot_general(
        aug_t, onehot, (((1,), (1,)), ((), ())),
        preferred_element_type=jnp.float32)

    @pl.when(n_idx == pl.num_programs(1) - 1)
    def _():
        acc = acc_ref[...]                                       # (Hp, tile_b)
        counts = acc[hidden:hidden + 1, :]                       # (1, tile_b)
        means = acc[:hidden, :] / jnp.maximum(counts, 1.0)       # exact divide
        h = jnp.maximum(means + b1_ref[...], 0.0)                # (H, tile_b)
        out = jnp.dot(w2t_ref[...], h, preferred_element_type=jnp.float32)
        out_ref[...] = (out + b2_ref[...]).astype(out_ref.dtype)  # (out_dim, tile_b)


@functools.partial(jax.jit, static_argnames=("num_graphs",))
def global_encoder_forward(x, edge_index, edge_attr, u, batch, params, num_graphs):
    """JAX wrapper matching GlobalEncoder.forward semantics.

    edge_index, edge_attr, u are accepted for signature parity but unused
    (exactly as in the PyTorch module's forward).
    """
    del edge_index, edge_attr, u
    w1, b1, w2, b2 = params
    n_nodes, in_dim = x.shape
    hidden = w1.shape[1]
    out_dim = w2.shape[1]
    hp = _round_up(hidden + 1, 8)            # sublane-aligned accumulator rows

    # Tiling: nodes = reduction axis (last, "arbitrary"); graphs = parallel
    # axis, 128 wide so accumulator / output stores are lane-dense.
    tile_n = min(1024, _round_up(n_nodes, 128))
    padded_n = _round_up(n_nodes, tile_n)
    tile_b = 128
    padded_b = _round_up(num_graphs, tile_b)
    num_n_tiles = padded_n // tile_n
    num_b_tiles = padded_b // tile_b
    # TODO(synk): for num_b_tiles > 1 with sorted (standard PyG) batch ids, use
    # PrefetchScalarGridSpec(num_scalar_prefetch=1) with per-graph-tile node
    # ranges so each graph tile only streams its own nodes (O(N) not O(B*N)).
    # TODO(synk): on v7x, when num_b_tiles == 1, split the node reduction over a
    # leading parallel axis (two partial accumulators + tiny epilogue) so the
    # second TensorCore gets work.

    # Feature-major augmented x: rows 0..F-1 are features, row F is the ones
    # row (folded segment-count column); padded node columns stay all-zero.
    x_t = jnp.zeros((in_dim + 1, padded_n), jnp.float32)
    x_t = x_t.at[:in_dim, :n_nodes].set(jnp.asarray(x, jnp.float32).T)
    x_t = x_t.at[in_dim, :n_nodes].set(1.0)
    batch_row = jnp.full((1, padded_n), -1, jnp.int32)
    batch_row = batch_row.at[0, :n_nodes].set(batch.astype(jnp.int32))

    # Augmented, transposed w1: rows 0..H-1 = w1.T, row H = e_F (count row),
    # remaining padding rows zero.
    w1t_aug = jnp.zeros((hp, in_dim + 1), jnp.float32)
    w1t_aug = w1t_aug.at[:hidden, :in_dim].set(w1.T.astype(jnp.float32))
    w1t_aug = w1t_aug.at[hidden, in_dim].set(1.0)
    b1_col = b1.reshape(hidden, 1).astype(jnp.float32)
    w2_t = w2.T.astype(jnp.float32)                    # (out_dim, hidden)
    b2_col = b2.reshape(out_dim, 1).astype(jnp.float32)

    grid_spec = pltpu.PrefetchScalarGridSpec(
        num_scalar_prefetch=0,
        grid=(num_b_tiles, num_n_tiles),
        in_specs=[
            pl.BlockSpec((in_dim + 1, tile_n), lambda b, n: (0, n)),  # x (f-major)
            pl.BlockSpec((1, tile_n), lambda b, n: (0, n)),           # batch row
            pl.BlockSpec((hp, in_dim + 1), lambda b, n: (0, 0)),      # aug w1^T
            pl.BlockSpec((hidden, 1), lambda b, n: (0, 0)),           # b1
            pl.BlockSpec((out_dim, hidden), lambda b, n: (0, 0)),     # w2^T
            pl.BlockSpec((out_dim, 1), lambda b, n: (0, 0)),          # b2
        ],
        out_specs=pl.BlockSpec((out_dim, tile_b), lambda b, n: (0, b)),
        scratch_shapes=[pltpu.VMEM((hp, tile_b), jnp.float32)],
    )

    out_t = pl.pallas_call(
        _global_encoder_kernel,
        out_shape=jax.ShapeDtypeStruct((out_dim, padded_b), jnp.float32),
        grid_spec=grid_spec,
        compiler_params=pltpu.CompilerParams(
            dimension_semantics=("parallel", "arbitrary")),
    )(x_t, batch_row, w1t_aug, b1_col, w2_t, b2_col)

    # Kernel emits a lane-dense (out_dim, padded_B) slab; transpose back here.
    return out_t[:, :num_graphs].T


def init_params(key, in_dim=2, hidden=32, out_dim=32):
    """Deterministic synthetic init (same shapes as Lin(2,32), Lin(32,32))."""
    k1, k2, k3, k4 = jax.random.split(key, 4)
    # Store weights as (in, out) so the math is x @ W + b.
    w1 = jax.random.normal(k1, (in_dim, hidden), jnp.float32) * 0.1
    b1 = jax.random.normal(k2, (hidden,), jnp.float32) * 0.1
    w2 = jax.random.normal(k3, (hidden, out_dim), jnp.float32) * 0.1
    b2 = jax.random.normal(k4, (out_dim,), jnp.float32) * 0.1
    return w1, b1, w2, b2


def _reference_forward(x, batch, params, num_graphs):
    """Pure-JAX reference for sanity checking."""
    w1, b1, w2, b2 = params
    sums = jax.ops.segment_sum(x, batch, num_segments=num_graphs)
    counts = jax.ops.segment_sum(jnp.ones((x.shape[0],), jnp.float32), batch,
                                 num_segments=num_graphs)
    means = sums / jnp.maximum(counts, 1.0)[:, None]
    h = jnp.maximum(means @ w1 + b1, 0.0)
    return h @ w2 + b2


if __name__ == "__main__":
    key = jax.random.PRNGKey(0)
    kx, kp, ke, kx2, kb2 = jax.random.split(key, 5)
    params = init_params(kp)

    # --- Case 1: small graph batch (8 nodes, 2 graphs), single tile. ---
    num_nodes, in_dim, num_graphs = 8, 2, 2
    x = jax.random.normal(kx, (num_nodes, in_dim), jnp.float32)
    batch = jnp.array([0, 0, 0, 0, 1, 1, 1, 1], dtype=jnp.int32)
    # Unused-by-forward inputs (present for signature parity).
    edge_index = jnp.zeros((2, 4), dtype=jnp.int32)
    edge_attr = jax.random.normal(ke, (4, 3), jnp.float32)
    u = jnp.zeros((num_graphs, 1), jnp.float32)

    out = global_encoder_forward(x, edge_index, edge_attr, u, batch,
                                 params, num_graphs)
    out = jax.block_until_ready(out)
    ref = _reference_forward(x, batch, params, num_graphs)
    assert out.shape == (num_graphs, 32)
    assert jnp.allclose(out, ref, atol=1e-2, rtol=1e-2)

    # --- Case 2: exercises multiple node tiles (reduction accumulator). ---
    n2, g2 = 1500, 10
    x2 = jax.random.normal(kx2, (n2, in_dim), jnp.float32)
    batch2 = jax.random.randint(kb2, (n2,), 0, g2, dtype=jnp.int32)
    out2 = global_encoder_forward(x2, edge_index, edge_attr,
                                  jnp.zeros((g2, 1), jnp.float32), batch2,
                                  params, g2)
    out2 = jax.block_until_ready(out2)
    ref2 = _reference_forward(x2, batch2, params, g2)
    assert out2.shape == (g2, 32)
    assert jnp.allclose(out2, ref2, atol=1e-2, rtol=1e-2)

    print("KERNEL_OK")
</pallas_src>

<mosaic_0001>
module attributes {stable_mosaic.version = 11 : i64} {
  func.func @_global_encoder_kernel(%arg0: i32, %arg1: i32, %arg2: memref<3x128xf32, #tpu.memory_space<vmem>>, %arg3: memref<1x128xi32, #tpu.memory_space<vmem>>, %arg4: memref<40x3xf32, #tpu.memory_space<vmem>>, %arg5: memref<32x1xf32, #tpu.memory_space<vmem>>, %arg6: memref<32x32xf32, #tpu.memory_space<vmem>>, %arg7: memref<32x1xf32, #tpu.memory_space<vmem>>, %arg8: memref<32x128xf32, #tpu.memory_space<vmem>>, %arg9: memref<40x128xf32, #tpu.memory_space<vmem>>) attributes {dimension_semantics = [#tpu.dimension_semantics<parallel>, #tpu.dimension_semantics<arbitrary>], iteration_bounds = array<i64: 1, 1>, scalar_prefetch = 0 : i64, scratch_operands = 1 : i64, tpu.core_type = #tpu.core_type<tc>, window_params = [{transform_indices = @transform_0, window_bounds = array<i64: 3, 128>}, {transform_indices = @transform_1, window_bounds = array<i64: 1, 128>}, {pipeline_mode = #tpu.pipeline_mode<synchronous>, transform_indices = @transform_2, window_bounds = array<i64: 40, 3>}, {pipeline_mode = #tpu.pipeline_mode<synchronous>, transform_indices = @transform_3, window_bounds = array<i64: 32, 1>}, {pipeline_mode = #tpu.pipeline_mode<synchronous>, transform_indices = @transform_4, window_bounds = array<i64: 32, 32>}, {pipeline_mode = #tpu.pipeline_mode<synchronous>, transform_indices = @transform_5, window_bounds = array<i64: 32, 1>}, {transform_indices = @transform_6, window_bounds = array<i64: 32, 128>}]} {
    %c0_i32 = arith.constant 0 : i32
    %0 = arith.cmpi eq, %arg1, %c0_i32 : i32
    %1 = arith.extui %0 : i1 to i32
    %c0_i32_0 = arith.constant 0 : i32
    %2 = arith.cmpi ne, %1, %c0_i32_0 : i32
    scf.if %2 {
      %cst_12 = arith.constant 0.000000e+00 : f32
      %39 = vector.broadcast %cst_12 : f32 to vector<40x128xf32>
      %c0_13 = arith.constant 0 : index
      %c0_14 = arith.constant 0 : index
      %40 = vector.load %arg9[%c0_13, %c0_14] : memref<40x128xf32, #tpu.memory_space<vmem>>, vector<40x128xf32>
      tpu.vector_store %arg9[%c0_13, %c0_14], %39 {strides = array<i32>} : memref<40x128xf32, #tpu.memory_space<vmem>>, vector<40x128xf32>,
    } else {
    }
    %c0 = arith.constant 0 : index
    %c0_1 = arith.constant 0 : index
    %3 = vector.load %arg2[%c0, %c0_1] : memref<3x128xf32, #tpu.memory_space<vmem>>, vector<3x128xf32>
    %c0_2 = arith.constant 0 : index
    %c0_3 = arith.constant 0 : index
    %4 = vector.load %arg3[%c0_2, %c0_3] : memref<1x128xi32, #tpu.memory_space<vmem>>, vector<1x128xi32>
    %c0_4 = arith.constant 0 : index
    %c0_5 = arith.constant 0 : index
    %5 = vector.load %arg4[%c0_4, %c0_5] : memref<40x3xf32, #tpu.memory_space<vmem>>, vector<40x3xf32>
    %6 = vector.extract_strided_slice %5 {offsets = [0, 0], sizes = [40, 1], strides = [1, 1]} : vector<40x3xf32> to vector<40x1xf32>
    %7 = vector.extract_strided_slice %3 {offsets = [0, 0], sizes = [1, 128], strides = [1, 1]} : vector<3x128xf32> to vector<1x128xf32>
    %8 = vector.broadcast %6 : vector<40x1xf32> to vector<40x128xf32>
    %9 = vector.broadcast %7 : vector<1x128xf32> to vector<40x128xf32>
    %10 = arith.mulf %8, %9 : vector<40x128xf32>
    %11 = vector.extract_strided_slice %5 {offsets = [0, 1], sizes = [40, 1], strides = [1, 1]} : vector<40x3xf32> to vector<40x1xf32>
    %12 = vector.extract_strided_slice %3 {offsets = [1, 0], sizes = [1, 128], strides = [1, 1]} : vector<3x128xf32> to vector<1x128xf32>
    %13 = vector.broadcast %11 : vector<40x1xf32> to vector<40x128xf32>
    %14 = vector.broadcast %12 : vector<1x128xf32> to vector<40x128xf32>
    %15 = arith.mulf %13, %14 : vector<40x128xf32>
    %16 = arith.addf %10, %15 : vector<40x128xf32>
    %17 = vector.extract_strided_slice %5 {offsets = [0, 2], sizes = [40, 1], strides = [1, 1]} : vector<40x3xf32> to vector<40x1xf32>
    %18 = vector.extract_strided_slice %3 {offsets = [2, 0], sizes = [1, 128], strides = [1, 1]} : vector<3x128xf32> to vector<1x128xf32>
    %19 = vector.broadcast %17 : vector<40x1xf32> to vector<40x128xf32>
    %20 = vector.broadcast %18 : vector<1x128xf32> to vector<40x128xf32>
    %21 = arith.mulf %19, %20 : vector<40x128xf32>
    %22 = arith.addf %16, %21 : vector<40x128xf32>
    %c128_i32 = arith.constant 128 : i32
    %23 = arith.muli %arg0, %c128_i32 : i32
    %24 = tpu.iota {dimensions = array<i32: 0>} : vector<128x1xi32>
    %25 = vector.broadcast %23 : i32 to vector<128x1xi32>
    %26 = arith.addi %25, %24 : vector<128x1xi32>
    %27 = vector.broadcast %26 : vector<128x1xi32> to vector<128x128xi32>
    %28 = vector.broadcast %4 : vector<1x128xi32> to vector<128x128xi32>
    %29 = arith.cmpi eq, %27, %28 : vector<128x128xi32>
    %30 = arith.extui %29 : vector<128x128xi1> to vector<128x128xi32>
    %31 = arith.sitofp %30 : vector<128x128xi32> to vector<128x128xf32>
    %c0_6 = arith.constant 0 : index
    %c0_7 = arith.constant 0 : index
    %32 = vector.load %arg9[%c0_6, %c0_7] : memref<40x128xf32, #tpu.memory_space<vmem>>, vector<40x128xf32>
    %cst = arith.constant dense<0.000000e+00> : vector<40x128xf32>
    %33 = tpu.matmul %22, %31, %cst {dimension_numbers = #tpu.dot_dimension_numbers<[1], [1], [0], [0], [0, 0, 1, 0], [], []>} : vector<40x128xf32>, vector<128x128xf32>, vector<40x128xf32> -> vector<40x128xf32>
    %34 = arith.addf %32, %33 : vector<40x128xf32>
    %c0_8 = arith.constant 0 : index
    %c0_9 = arith.constant 0 : index
    %35 = vector.load %arg9[%c0_8, %c0_9] : memref<40x128xf32, #tpu.memory_space<vmem>>, vector<40x128xf32>
    tpu.vector_store %arg9[%c0_8, %c0_9], %34 {strides = array<i32>} : memref<40x128xf32, #tpu.memory_space<vmem>>, vector<40x128xf32>,
    %c0_i32_10 = arith.constant 0 : i32
    %36 = arith.cmpi eq, %arg1, %c0_i32_10 : i32
    %37 = arith.extui %36 : i1 to i32
    %c0_i32_11 = arith.constant 0 : i32
    %38 = arith.cmpi ne, %37, %c0_i32_11 : i32
    scf.if %38 {
      %c0_12 = arith.constant 0 : index
      %c0_13 = arith.constant 0 : index
      %39 = vector.load %arg9[%c0_12, %c0_13] : memref<40x128xf32, #tpu.memory_space<vmem>>, vector<40x128xf32>
      %40 = vector.extract_strided_slice %39 {offsets = [32, 0], sizes = [1, 128], strides = [1, 1]} : vector<40x128xf32> to vector<1x128xf32>
      %41 = vector.extract_strided_slice %39 {offsets = [0, 0], sizes = [32, 128], strides = [1, 1]} : vector<40x128xf32> to vector<32x128xf32>
      %cst_14 = arith.constant 1.000000e+00 : f32
      %42 = vector.broadcast %cst_14 : f32 to vector<1x128xf32>
      %43 = arith.maximumf %40, %42 : vector<1x128xf32>
      %44 = vector.broadcast %43 : vector<1x128xf32> to vector<32x128xf32>
      %45 = arith.divf %41, %44 : vector<32x128xf32>
      %c0_15 = arith.constant 0 : index
      %c0_16 = arith.constant 0 : index
      %46 = vector.load %arg5[%c0_15, %c0_16] : memref<32x1xf32, #tpu.memory_space<vmem>>, vector<32x1xf32>
      %47 = vector.broadcast %46 : vector<32x1xf32> to vector<32x128xf32>
      %48 = arith.addf %45, %47 : vector<32x128xf32>
      %cst_17 = arith.constant 0.000000e+00 : f32
      %49 = vector.broadcast %cst_17 : f32 to vector<32x128xf32>
      %50 = arith.maximumf %48, %49 : vector<32x128xf32>
      %c0_18 = arith.constant 0 : index
      %c0_19 = arith.constant 0 : index
      %51 = vector.load %arg6[%c0_18, %c0_19] : memref<32x32xf32, #tpu.memory_space<vmem>>, vector<32x32xf32>
      %cst_20 = arith.constant dense<0.000000e+00> : vector<32x128xf32>
      %52 = tpu.matmul %51, %50, %cst_20 {dimension_numbers = #tpu.dot_dimension_numbers<[1], [0], [0], [1], [0, 0, 1, 1], [], []>} : vector<32x32xf32>, vector<32x128xf32>, vector<32x128xf32> -> vector<32x128xf32>
      %c0_21 = arith.constant 0 : index
      %c0_22 = arith.constant 0 : index
      %53 = vector.load %arg7[%c0_21, %c0_22] : memref<32x1xf32, #tpu.memory_space<vmem>>, vector<32x1xf32>
      %54 = vector.broadcast %53 : vector<32x1xf32> to vector<32x128xf32>
      %55 = arith.addf %52, %54 : vector<32x128xf32>
      %c0_23 = arith.constant 0 : index
      %c0_24 = arith.constant 0 : index
      %56 = vector.load %arg8[%c0_23, %c0_24] : memref<32x128xf32, #tpu.memory_space<vmem>>, vector<32x128xf32>
      tpu.vector_store %arg8[%c0_23, %c0_24], %55 {strides = array<i32>} : memref<32x128xf32, #tpu.memory_space<vmem>>, vector<32x128xf32>,
    } else {
    }
    return
  }
  func.func @transform_0(%arg0: i32, %arg1: i32) -> (i32, i32) {
    %c0_i32 = arith.constant 0 : i32
    %c0_i32_0 = arith.constant 0 : i32
    return %c0_i32, %arg1 : i32, i32
  }
  func.func @transform_1(%arg0: i32, %arg1: i32) -> (i32, i32) {
    %c0_i32 = arith.constant 0 : i32
    %c0_i32_0 = arith.constant 0 : i32
    return %c0_i32, %arg1 : i32, i32
  }
  func.func @transform_2(%arg0: i32, %arg1: i32) -> (i32, i32) {
    %c0_i32 = arith.constant 0 : i32
    %c0_i32_0 = arith.constant 0 : i32
    %c0_i32_1 = arith.constant 0 : i32
    return %c0_i32, %c0_i32_0 : i32, i32
  }
  func.func @transform_3(%arg0: i32, %arg1: i32) -> (i32, i32) {
    %c0_i32 = arith.constant 0 : i32
    %c0_i32_0 = arith.constant 0 : i32
    %c0_i32_1 = arith.constant 0 : i32
    return %c0_i32, %c0_i32_0 : i32, i32
  }
  func.func @transform_4(%arg0: i32, %arg1: i32) -> (i32, i32) {
    %c0_i32 = arith.constant 0 : i32
    %c0_i32_0 = arith.constant 0 : i32
    %c0_i32_1 = arith.constant 0 : i32
    return %c0_i32, %c0_i32_0 : i32, i32
  }
  func.func @transform_5(%arg0: i32, %arg1: i32) -> (i32, i32) {
    %c0_i32 = arith.constant 0 : i32
    %c0_i32_0 = arith.constant 0 : i32
    %c0_i32_1 = arith.constant 0 : i32
    return %c0_i32, %c0_i32_0 : i32, i32
  }
  func.func @transform_6(%arg0: i32, %arg1: i32) -> (i32, i32) {
    %c0_i32 = arith.constant 0 : i32
    %c0_i32_0 = arith.constant 0 : i32
    return %c0_i32, %arg0 : i32, i32
  }
}

</mosaic_0001>

<bundles_post_ra>
// kernel: global_encoder_forward.1
= control target key start
LH: loop header
LB: loop body
LE: loop exit
PB: predicated region body
PF: predicated region fallthrough
CT: control target
= control target key end

     0   :  { %v700_v0 = vmov 2   ;;  %v701_v1 = vmov 0   ;;  %v64_v3 = vlaneseq  ;;  %v702_v5 = vmov 0.0|0.0   ;;  %s895_s2 = inlined_call_operand.vmem [shape: f32[40,3], index: 2, kind: input, shape index: {}]   ;;  %s896_s1 = inlined_call_operand.vmem [shape: s32[1,128], index: 1, kind: input, shape index: {}]   ;;  %s897_s3 = inlined_call_operand.vmem [shape: f32[32,1], index: 3, kind: input, shape index: {}]   ;;  %s898_s5 = inlined_call_operand.vmem [shape: f32[32,1], index: 5, kind: input, shape index: {}]   ;;  %s899_s0 = inlined_call_operand.vmem [shape: f32[3,128], index: 0, kind: input, shape index: {}]   ;;  %s900_s4 = inlined_call_operand.vmem [shape: f32[32,32], index: 4, kind: input, shape index: {}]   ;;  %s901_s6 = inlined_call_operand.vmem [shape: f32[32,128], index: 6, kind: output, shape index: {}]  }
   0x1   :  { %685 = vset.pattern.permute.xlu1 %v700_v0  ;;  %683 = vset.pattern.permute.xlu0 %v701_v1  ;;  %v34_v2 = vld [vmem:[%s895_s2] sm:$0xff]  ;;  %v35_v7 = vld [vmem:[%s895_s2 + $0x8] sm:$0xff]  ;;  %v703_v9 = vmov 1   ;;  %v704_v12 = vmov 1.0|1.0   ;;  %v36_v13 = vld [vmem:[%s895_s2 + $0x10] sm:$0xff] }
   0x2   :  { %108 = vperm.xlu1 %685, %v34_v2   ;;  %41 = vperm.xlu0 %683, %v34_v2   ;;  %v750_v4 = vld [vmem:[%s896_s1] ss:$0 sm:$0xff]  ;;  %v753_v6 = vshrl.u32 %v64_v3, 7  ;;  %vm705_vm6 = vmmov 0   ;;  %v706_v16 = vmov 0.0   ;;  %v37_v17 = vld [vmem:[%s895_s2 + $0x18] sm:$0xff] }
   0x3   :  { %644 = vmatprep.subr.bf16.mxu0 %v702_v5  ;;  %615 = vmatprep.mubr.msk.f32.mxu0 %vm705_vm6, %v706_v16  ;;  %v38_v18 = vld [vmem:[%s895_s2 + $0x20] sm:$0xff]  ;;  %v352_v27 = vld [vmem:[%s897_s3 + $0x8] sm:$0xff]  ;;  %v353_v29 = vld [vmem:[%s897_s3 + $0x10] sm:$0xff] }
   0x4   :  { %v144_v8 = vadd.s32 8, %v753_v6  ;;  %vm180_vm0 = vcmp.eq.s32.totalorder %v753_v6, %v750_v4  ;;  %v145_v10 = vadd.s32 16, %v753_v6  ;;  %v146_v11 = vadd.s32 24, %v753_v6  ;;  %v351_v28 = vld [vmem:[%s897_s3] sm:$0xff]  ;;  %v354_v30 = vld [vmem:[%s897_s3 + $0x18] sm:$0xff]  ;;  %v388_v32 = vld [vmem:[%s898_s5 + $0x8] sm:$0xff] }
   0x5   :  { %v147_v14 = vadd.s32 32, %v753_v6  ;;  %v148_v15 = vadd.s32 40, %v753_v6  ;;  %v149_v19 = vadd.s32 48, %v753_v6  ;;  %v150_v20 = vadd.s32 56, %v753_v6  ;;  %v387_v31 = vld [vmem:[%s898_s5] sm:$0xff]  ;;  %v389_v35 = vld [vmem:[%s898_s5 + $0x10] sm:$0xff] }
   0x6   :  { %686 = vset.pattern.permute.xlu1 %v701_v1  ;;  %684 = vset.pattern.permute.xlu0 %v703_v9  ;;  %vm181_vm1 = vcmp.eq.s32.totalorder %v144_v8, %v750_v4  ;;  %vm182_vm3 = vcmp.eq.s32.totalorder %v145_v10, %v750_v4  ;;  %vm183_vm4 = vcmp.eq.s32.totalorder %v146_v11, %v750_v4  ;;  %v151_v21 = vadd.s32 64, %v753_v6  ;;  %v390_v36 = vld [vmem:[%s898_s5 + $0x18] sm:$0xff]  ;;  %v32_v39 = vld [vmem:[%s899_s0] sm:$0x7] }
   0x7   :  { %46 = vperm.xlu1 %686, %v35_v7   ;;  %74 = vperm.xlu0 %684, %v34_v2   ;;  %vm645_vm2 = vmpackc.low %vm181_vm1, %vm180_vm0  ;;  %vm184_vm7 = vcmp.eq.s32.totalorder %v147_v14, %v750_v4  ;;  %vm185_vm8 = vcmp.eq.s32.totalorder %v148_v15, %v750_v4  ;;  %vm186_vm10 = vcmp.eq.s32.totalorder %v149_v19, %v750_v4  ;;  %v152_v22 = vadd.s32 72, %v753_v6 }
   0x8   :  { %646 = vmatpush3.bf16.xpose.msk.msra.mxu0 %vm645_vm2, %v704_v12  ;;  %vm648_vm5 = vmpackc.low %vm183_vm4, %vm182_vm3  ;;  %vm187_vm11 = vcmp.eq.s32.totalorder %v150_v20, %v750_v4  ;;  %vm188_vm13 = vcmp.eq.s32.totalorder %v151_v21, %v750_v4  ;;  %v153_v23 = vadd.s32 80, %v753_v6  ;;  %v154_v24 = vadd.s32 88, %v753_v6 }
   0x9   :  { %647 = vmatprep.subr.bf16.mxu0 %v702_v5  ;;  %vm651_vm9 = vmpackc.low %vm185_vm8, %vm184_vm7  ;;  %vm189_vm14 = vcmp.eq.s32.totalorder %v152_v22, %v750_v4  ;;  %v155_v25 = vadd.s32 96, %v753_v6  ;;  %v156_v26 = vadd.s32 104, %v753_v6  ;;  %v157_v33 = vadd.s32 112, %v753_v6  ;;  %v383_v22 = vld [vmem:[%s900_s4] sm:$0xff] }
   0xa   :  { %vm654_vm12 = vmpackc.low %vm187_vm11, %vm186_vm10  ;;  %vm190_vm0 = vcmp.eq.s32.totalorder %v153_v23, %v750_v4  ;;  %vm191_vm1 = vcmp.eq.s32.totalorder %v154_v24, %v750_v4  ;;  %v158_v34 = vadd.s32 120, %v753_v6  ;;  %v66_v37 = vsub.s32 0, %v753_v6 }
   0xb   :  { %687 = vset.pattern.permute.xlu1 %v703_v9  ;;  %688 = vset.pattern.permute.xlu0 %v700_v0  ;;  %vm657_vm15 = vmpackc.low %vm189_vm14, %vm188_vm13  ;;  %vm192_vm3 = vcmp.eq.s32.totalorder %v155_v25, %v750_v4  ;;  %vm193_vm4 = vcmp.eq.s32.totalorder %v156_v26, %v750_v4  ;;  %vm194_vm7 = vcmp.eq.s32.totalorder %v157_v33, %v750_v4  ;;  %v95_v38 = vsub.s32 1, %v753_v6 }
   0xc   :  { %78 = vperm.xlu1 %687, %v35_v7   ;;  %112 = vperm.xlu0 %688, %v35_v7   ;;  %vm660_vm2 = vmpackc.low %vm191_vm1, %vm190_vm0  ;;  %vm195_vm8 = vcmp.eq.s32.totalorder %v158_v34, %v750_v4  ;;  %v129_v40 = vsub.s32 2, %v753_v6  ;;  %v67_v43 = vrot.slane %v32_v39, %v66_v37  ;;  %vm411_vm10 = vcmask 261120  }
   0xd   :  { %v96_v44 = vrot.slane %v32_v39, %v95_v38  ;;  %638 = vmatprep.mubr.msk.f32.mxu1 %vm411_vm10, %v383_v22 }
   0xe   :  { %v130_v45 = vrot.slane %v32_v39, %v129_v40 }
  0x10   :  { %689 = vset.pattern.permute.xlu1 %v701_v1  ;;  %116 = vperm.xlu0 %688, %v36_v13  }
  0x11   :  { %51 = vperm.xlu1 %689, %v36_v13   ;;  %649 = vmatpush3.bf16.xpose.msk.msra.mxu0 %vm648_vm5, %v704_v12  ;;  %vm663_vm5 = vmpackc.low %vm193_vm4, %vm192_vm3 }
  0x12   :  { %650 = vmatprep.subr.bf16.mxu0 %v702_v5 }
  0x14   :  { %692 = vset.pattern.permute.xlu0 %v703_v9 }
  0x15   :  { %690 = vset.pattern.permute.xlu1 %v703_v9  ;;  %86 = vperm.xlu0 %692, %v37_v17  }
  0x16   :  { %82 = vperm.xlu1 %690, %v36_v13  }
  0x19   :  { %90 = vperm.xlu0 %692, %v38_v18   ;;  %652 = vmatpush3.bf16.xpose.msk.msra.mxu0 %vm651_vm9, %v704_v12  ;;  %vm666_vm9 = vmpackc.low %vm195_vm8, %vm194_vm7 }
  0x1a   :  { %691 = vset.pattern.permute.xlu1 %v701_v1  ;;  %653 = vmatprep.subr.bf16.mxu0 %v702_v5 }
  0x1b   :  { %56 = vperm.xlu1 %691, %v37_v17  }
  0x1d   :  { %696 = vset.pattern.permute.xlu0 %v701_v1 }
  0x1e   :  { %357 = vperm.xlu0 %696, %v351_v28  }
  0x1f   :  { %693 = vset.pattern.permute.xlu1 %v700_v0 }
  0x20   :  { %120 = vperm.xlu1 %693, %v37_v17  }
  0x21   :  { %655 = vmatpush3.bf16.xpose.msk.msra.mxu0 %vm654_vm12, %v704_v12 }
  0x22   :  { %656 = vmatprep.subr.bf16.mxu0 %v702_v5  ;;  %372 = vperm.xlu0 %696, %v354_v30  }
  0x24   :  { %694 = vset.pattern.permute.xlu1 %v701_v1 }
  0x25   :  { %61 = vperm.xlu1 %694, %v38_v18  }
  0x26   :  { %398 = vperm.xlu0 %696, %v388_v32  }
  0x29   :  { %695 = vset.pattern.permute.xlu1 %v700_v0  ;;  %658 = vmatpush3.bf16.xpose.msk.msra.mxu0 %vm657_vm15, %v704_v12 }
  0x2a   :  { %124 = vperm.xlu1 %695, %v38_v18   ;;  %659 = vmatprep.subr.bf16.mxu0 %v702_v5 }
  0x2b   :  { %408 = vperm.xlu0 %696, %v390_v36  }
  0x2e   :  { %697 = vset.pattern.permute.xlu1 %v701_v1 }
  0x2f   :  { %362 = vperm.xlu1 %697, %v352_v27  }
  0x31   :  { %661 = vmatpush3.bf16.xpose.msk.msra.mxu0 %vm660_vm2, %v704_v12 }
  0x32   :  { %662 = vmatprep.subr.bf16.mxu0 %v702_v5 }
  0x33   :  { %367 = vperm.xlu1 %697, %v353_v29  }
  0x37   :  { %393 = vperm.xlu1 %697, %v387_v31  }
  0x39   :  { %664 = vmatpush3.bf16.xpose.msk.msra.mxu0 %vm663_vm5, %v704_v12 }
  0x3a   :  { %665 = vmatprep.subr.bf16.mxu0 %v702_v5 }
  0x3b   :  { %403 = vperm.xlu1 %697, %v389_v35  }
  0x41   :  { %667 = vmatpush3.bf16.xpose.msk.msra.mxu0 %vm666_vm9, %v704_v12 }
  0x81   :  { %v109_v41 = vpop.permute.xlu1 %108  ;;  %v42_v42 = vpop.permute.xlu0 %41 }
  0x82   :  { %v68_v46 = vmul.f32 %v67_v43, %v42_v42  ;;  %v131_v50 = vmul.f32 %v130_v45, %v109_v41 }
  0x86   :  { %v47_v47 = vpop.permute.xlu1 %46  ;;  %v75_v48 = vpop.permute.xlu0 %74 }
  0x87   :  { %v97_v49 = vmul.f32 %v96_v44, %v75_v48  ;;  %v69_v55 = vmul.f32 %v67_v43, %v47_v47 }
  0x89   :  { %v102_v51 = vadd.f32 %v97_v49, %v68_v46 }
  0x8b   :  { %v79_v52 = vpop.permute.xlu1 %78  ;;  %v113_v53 = vpop.permute.xlu0 %112  ;;  %v136_v54 = vadd.f32 %v131_v50, %v102_v51 }
  0x8c   :  { %v98_v56 = vmul.f32 %v96_v44, %v79_v52  ;;  %v132_v57 = vmul.f32 %v130_v45, %v113_v53  ;;  %v384_v52 = vld [vmem:[%s900_s4 + $0x8] sm:$0xff]  ;;  %v385_v53 = vld [vmem:[%s900_s4 + $0x10] sm:$0xff] }
  0x8d   :  { %616 = vmatmul.mubr.f32.vlgmr.msra.gmra.mrb[0].mxu0 %v136_v54  ;;  %v386_v54 = vld [vmem:[%s900_s4 + $0x18] sm:$0xff] }
  0x8e   :  { %v103_v58 = vadd.f32 %v98_v56, %v69_v55  ;;  %618 = vmatprep.mubr.msk.f32.mxu0 %vm705_vm6, %v706_v16 }
  0x8f   :  { %v117_v61 = vpop.permute.xlu0 %116 }
  0x90   :  { %v137_v59 = vadd.f32 %v132_v57, %v103_v58  ;;  %v52_v60 = vpop.permute.xlu1 %51  ;;  %v133_v1 = vmul.f32 %v130_v45, %v117_v61 }
  0x91   :  { %v70_v63 = vmul.f32 %v67_v43, %v52_v60 }
  0x92   :  { %619 = vmatmul.mubr.f32.gmra.mrb[2].mxu0 %v137_v59 }
  0x93   :  { %621 = vmatprep.mubr.msk.f32.mxu0 %vm705_vm6, %v706_v16 }
  0x94   :  { %v87_v3 = vpop.permute.xlu0 %86 }
  0x95   :  { %v83_v62 = vpop.permute.xlu1 %82  ;;  %v100_v8 = vmul.f32 %v96_v44, %v87_v3 }
  0x96   :  { %v99_v0 = vmul.f32 %v96_v44, %v83_v62 }
  0x98   :  { %v104_v2 = vadd.f32 %v99_v0, %v70_v63  ;;  %v91_v13 = vpop.permute.xlu0 %90 }
  0x99   :  { %v101_v15 = vmul.f32 %v96_v44, %v91_v13 }
  0x9a   :  { %v138_v4 = vadd.f32 %v133_v1, %v104_v2  ;;  %v57_v5 = vpop.permute.xlu1 %56 }
  0x9b   :  { %v71_v7 = vmul.f32 %v67_v43, %v57_v5 }
  0x9c   :  { %622 = vmatmul.mubr.f32.gmra.mrb[4].mxu0 %v138_v4 }
  0x9d   :  { %624 = vmatprep.mubr.msk.f32.mxu0 %vm705_vm6, %v706_v16  ;;  %v105_v10 = vadd.f32 %v100_v8, %v71_v7  ;;  %v358_v35 = vpop.permute.xlu0 %357 }
  0x9f   :  { %v121_v9 = vpop.permute.xlu1 %120 }
  0xa0   :  { %v134_v11 = vmul.f32 %v130_v45, %v121_v9 }
  0xa2   :  { %v139_v12 = vadd.f32 %v134_v11, %v105_v10 }
  0xa4   :  { %v62_v14 = vpop.permute.xlu1 %61  ;;  %625 = vmatmul.mubr.f32.gmra.mrb[6].mxu0 %v139_v12 }
  0xa5   :  { %627 = vmatprep.mubr.msk.f32.mxu0 %vm705_vm6, %v706_v16  ;;  %v72_v17 = vmul.f32 %v67_v43, %v62_v14  ;;  %v373_v43 = vpop.permute.xlu0 %372 }
  0xa7   :  { %v106_v19 = vadd.f32 %v101_v15, %v72_v17 }
  0xa9   :  { %v125_v18 = vpop.permute.xlu1 %124  ;;  %v399_v55 = vpop.permute.xlu0 %398 }
  0xaa   :  { %v135_v20 = vmul.f32 %v130_v45, %v125_v18 }
  0xac   :  { %v140_v21 = vadd.f32 %v135_v20, %v106_v19 }
  0xad   :  { %v409_v61 = vpop.permute.xlu0 %408 }
  0xae   :  { %628 = vmatmul.mubr.f32.gmra.mrb[8].mxu0 %v140_v21  ;;  %v363_v34 = vpop.permute.xlu1 %362 }
  0xb2   :  { %v368_v42 = vpop.permute.xlu1 %367 }
  0xb6   :  { %v394_v56 = vpop.permute.xlu1 %393 }
  0xba   :  { %v404_v63 = vpop.permute.xlu1 %403 }
 0x160   :  { %v299_v23 = vpop.f32.mrb[0].mxu0 }
 0x161   :  { %v617_v24 = vpop.f32.mrb[1].mxu0 }
 0x165   :  { %v304_v25 = vpop.f32.mrb[2].mxu0 }
 0x166   :  { %v620_v26 = vpop.f32.mrb[3].mxu0 }
 0x16f   :  { %v309_v27 = vpop.f32.mrb[4].mxu0 }
 0x170   :  { %v623_v16 = vpop.f32.mrb[5].mxu0 }
 0x177   :  { %v314_v28 = vpop.f32.mrb[6].mxu0 }
 0x178   :  { %v626_v29 = vpop.f32.mrb[7].mxu0 }
 0x181   :  { %v319_v30 = vpop.f32.mrb[8].mxu0 }
 0x182   :  { %v341_v31 = vmax.f32 %v319_v30, 1.0  ;;  %v629_v32 = vpop.f32.mrb[9].mxu0 }
 0x184   :  { %v345_v33 = vrot.slane %v341_v31, %v66_v37 }
 0x186   :  { %698 = vrcp.f32 %v345_v33 }
 0x190   :  { %v699_v36 = vpop.eup %698 }
 0x191   :  { %v348_v38 = vmul.f32 %v699_v36, %v304_v25  ;;  %v347_v39 = vmul.f32 %v699_v36, %v299_v23  ;;  %v349_v40 = vmul.f32 %v699_v36, %v309_v27  ;;  %v350_v41 = vmul.f32 %v699_v36, %v314_v28 }
 0x193   :  { %v376_v44 = vadd.f32 %v363_v34, %v348_v38  ;;  %v375_v45 = vadd.f32 %v358_v35, %v347_v39  ;;  %v377_v46 = vadd.f32 %v368_v42, %v349_v40  ;;  %v378_v47 = vadd.f32 %v373_v43, %v350_v41 }
 0x195   :  { %v380_v48 = vmax.f32 %v376_v44, 0.0  ;;  %v379_v49 = vmax.f32 %v375_v45, 0.0  ;;  %v381_v50 = vmax.f32 %v377_v46, 0.0  ;;  %v382_v51 = vmax.f32 %v378_v47, 0.0 }
 0x197   :  { %v672_v6 = vpack.c.bf16 %v382_v51, %v381_v50  ;;  %v668_v37 = vpack.c.bf16 %v380_v48, %v379_v49 }
 0x199   :  { %669 = vmatprep.subr.bf16.mxu1 %v668_v37 }
 0x19a   :  { %671 = vmatpush3.bf16.msra.mxu1 %v668_v37 }
 0x19b   :  { %673 = vmatprep.subr.bf16.mxu1 %v672_v6 }
 0x19e   :  { %675 = vmatpush3.bf16.msra.mxu1 %v672_v6 }
 0x1a1   :  { %639 = vmatmul.mubr.msk.f32.vlgmr.msra.gmra.mrb[0].mxu1 %vm411_vm10, %v384_v52 }
 0x1a2   :  { %641 = vmatprep.mubr.msk.f32.mxu1 %vm411_vm10, %v385_v53 }
 0x1a5   :  { %642 = vmatmul.mubr.msk.f32.gmra.mrb[2].mxu1 %vm411_vm10, %v386_v54 }
 0x274   :  { %v640_v57 = vpop.f32.mrb[0].mxu1 }
 0x275   :  { %v496_v58 = vadd.f32 %v640_v57, %v399_v55  ;;  %v490_v59 = vpop.f32.mrb[1].mxu1 }
 0x276   :  { %v491_v60 = vadd.f32 %v490_v59, %v394_v56 }
 0x277   :  { %510 = vst [vmem:[%s901_s6 + $0x8] sm:$0xff] %v496_v58 }
 0x278   :  { %509 = vst [vmem:[%s901_s6] sm:$0xff] %v491_v60  ;;  %v643_v62 = vpop.f32.mrb[2].mxu1 }
 0x279   :  { %v506_v0 = vadd.f32 %v643_v62, %v409_v61  ;;  %v500_v1 = vpop.f32.mrb[3].mxu1 }
 0x27a   :  { %v501_v2 = vadd.f32 %v500_v1, %v404_v63 }
 0x27b   :  { %512 = vst [vmem:[%s901_s6 + $0x18] sm:$0xff] %v506_v0 }
 0x27c   :  { %511 = vst [vmem:[%s901_s6 + $0x10] sm:$0xff] %v501_v2 }

</bundles_post_ra>
